<compile_context>
chip_gen: v5e
topology: v5e:2x2
jax: 0.10.0
libtpu: 0.0.40
codegen_flags: <defaults>
</compile_context>

<pallas_src>
import functools

import jax
import jax.numpy as jnp
from jax.experimental import pallas as pl
from jax.experimental.pallas import tpu as pltpu


def _round_up(x, m):
    return (x + m - 1) // m * m


def _cdiv(a, b):
    return (a + b - 1) // b


def _tpu_generation():
    try:
        kind = jax.devices()[0].device_kind.lower()
    except Exception:
        return "unknown"
    if "v7" in kind:
        return "v7x"
    if "v6" in kind:
        return "v6e"
    if "v5 lite" in kind or "v5lite" in kind or "v5e" in kind:
        return "v5e"
    if "v5" in kind:
        return "v5p"
    if "v4" in kind:
        return "v4"
    return "unknown"


def _blk_bytes(rows, cols, itemsize, nbuf=2):
    # VMEM footprint of one pipelined block, padded to the (8, 128) layout granule.
    return nbuf * _round_up(rows, 8) * _round_up(cols, 128) * itemsize


def _pick_tn(out_pad, target):
    """Largest multiple of 128 that divides out_pad and is <= target (>= 128)."""
    best = 128
    d = 128
    lim = min(target, out_pad)
    while d <= lim:
        if out_pad % d == 0:
            best = d
        d += 128
    return best


def _next_smaller_tn(out_pad, cur):
    d = cur - 128
    while d >= 128:
        if out_pad % d == 0:
            return d
        d -= 128
    return 128


def _prefix_mlp_kernel(x_ref, w1_ref, b1_ref, w2_ref, b2_ref, o_ref, h_ref):
    # x_ref:  (tm, H)  bf16     w1_ref: (H, PH) bf16   b1_ref: (1, PH)  f32
    # w2_ref: (PH, tn) bf16     b2_ref: (1, tn) f32
    # o_ref:  (tm, tn) f32      h_ref:  (tm, PH) bf16 scratch (persists across j)
    j = pl.program_id(1)

    # First matmul + tanh only once per row tile.  The OUT axis is the innermost,
    # "arbitrary" grid axis, so j == 0 runs first for every row tile i; h_ref is
    # then reused across all OUT tiles of that row tile.
    @pl.when(j == 0)
    def _():
        h = jnp.dot(x_ref[...], w1_ref[...], preferred_element_type=jnp.float32)
        h_ref[...] = jnp.tanh(h + b1_ref[...]).astype(h_ref.dtype)

    out = jnp.dot(h_ref[...], w2_ref[...], preferred_element_type=jnp.float32)
    o_ref[...] = (out + b2_ref[...]).astype(o_ref.dtype)


@functools.partial(jax.jit, static_argnames=("tm", "tn"))
def prefix_mlp(x, w1, b1, w2, b2, *, tm=None, tn=None):
    """x: (M, H) bf16/f32. Returns (M, OUT) float32.

    Grid (M // tm, OUT // tn): w2/b2 stream per OUT tile, h = tanh(x@w1 + b1) is
    computed once per row tile into a bf16 VMEM scratch and reused over OUT tiles.
    """
    M, H = x.shape
    PH = w1.shape[1]
    OUT = w2.shape[1]
    out_dtype = jnp.float32  # matches PyTorch; TODO(synk): bf16 if downstream allows
    x_isz = jnp.dtype(x.dtype).itemsize
    w_isz = jnp.dtype(w1.dtype).itemsize
    o_isz = jnp.dtype(out_dtype).itemsize

    # ---- generation-specific budgets -----------------------------------------
    gen = _tpu_generation()
    if gen == "v7x":
        big_tm, vmem_cap, single_buf_consts = 512, 52 << 20, True
    elif gen in ("v6e", "v5e", "v5p", "v4"):
        big_tm, vmem_cap, single_buf_consts = 1024, 100 << 20, False
    else:
        big_tm, vmem_cap, single_buf_consts = 512, 48 << 20, False
    w1_bufs = 1 if single_buf_consts else 2

    # ---- tile selection -------------------------------------------------------
    if tm is None:
        # As few / as large row tiles as possible: every extra row tile is one more
        # full pass over w2 from HBM.  Never split a small M across tiles just to
        # feed a second core -- the kernel is bandwidth-bound, not compute-bound.
        n_row_tiles = max(1, _cdiv(M, big_tm))
        tm = _round_up(_cdiv(M, n_row_tiles), 16)
    else:
        tm = _round_up(tm, 16)

    OUT_pad = _round_up(OUT, 128)
    if tn is None:
        tn = _pick_tn(OUT_pad, 4096)  # largest lane-dense divisor of OUT_pad <= 4096
    else:
        tn = _pick_tn(OUT_pad, _round_up(tn, 128))

    # ---- shrink tiles until the (layout-padded, double-buffered) blocks fit ----
    def vmem_needed(tm_, tn_):
        b = _blk_bytes(tm_, H, x_isz)                     # x tile (double buffered)
        b += _blk_bytes(H, PH, w_isz, nbuf=w1_bufs)       # w1 (constant block)
        b += _blk_bytes(1, PH, 4, nbuf=w1_bufs)           # b1 (constant block)
        b += _blk_bytes(PH, tn_, w_isz)                   # w2 tile (streamed over j)
        b += _blk_bytes(1, tn_, 4)                        # b2 tile
        b += _blk_bytes(tm_, tn_, o_isz)                  # out tile
        b += _round_up(tm_, 8) * _round_up(PH, 128) * 2   # h scratch (bf16, 1 buf)
        return b + (2 << 20)                              # Mosaic internal headroom

    while vmem_needed(tm, tn) > vmem_cap:
        if tn > 512:
            tn = _next_smaller_tn(OUT_pad, tn)
        elif tm > 256:
            tm = max(256, _round_up(tm // 2, 16))
        elif tn > 128:
            tn = _next_smaller_tn(OUT_pad, tn)
        elif tm > 16:
            tm = max(16, _round_up(tm // 2, 16))
        else:
            break

    M_pad = _round_up(M, tm)

    # ---- padding so every block is full (lane/sublane-dense stores) ------------
    # x is tiny; w2/b2 are only padded when OUT is not already a multiple of 128
    # (tn always divides OUT_pad, so the expensive w2 pad is avoided for the usual
    # OUT = 2 * layers * hidden shapes).
    if M_pad != M:
        x = jnp.pad(x, ((0, M_pad - M), (0, 0)))
    if OUT_pad != OUT:
        w2 = jnp.pad(w2, ((0, 0), (0, OUT_pad - OUT)))
        b2 = jnp.pad(b2, ((0, 0), (0, OUT_pad - OUT)))

    grid = (M_pad // tm, OUT_pad // tn)

    def _const_spec(shape):
        # Constant (index_map == (0,0)) blocks: single-buffer them on v7x to reclaim
        # VMEM for the out/w2 tiles; fall back to the default spec if unsupported.
        if single_buf_consts:
            try:
                return pl.BlockSpec(shape, lambda i, j: (0, 0),
                                    pipeline_mode=pl.Buffered(1))
            except Exception:
                pass
        return pl.BlockSpec(shape, lambda i, j: (0, 0))

    out = pl.pallas_call(
        _prefix_mlp_kernel,
        out_shape=jax.ShapeDtypeStruct((M_pad, OUT_pad), out_dtype),
        grid=grid,
        in_specs=[
            pl.BlockSpec((tm, H), lambda i, j: (i, 0)),    # x: per row tile
            _const_spec((H, PH)),                          # w1: constant block
            _const_spec((1, PH)),                          # b1: constant block
            pl.BlockSpec((PH, tn), lambda i, j: (0, j)),   # w2: streamed over OUT
            pl.BlockSpec((1, tn), lambda i, j: (0, j)),    # b2: streamed over OUT
        ],
        out_specs=pl.BlockSpec((tm, tn), lambda i, j: (i, j)),
        scratch_shapes=[pltpu.VMEM((tm, PH), jnp.bfloat16)],
        compiler_params=pltpu.CompilerParams(
            dimension_semantics=("parallel", "arbitrary"),
            vmem_limit_bytes=int(vmem_cap),
        ),
    )(x, w1, b1, w2, b2)

    return out[:M, :OUT]


class PrefixEncoderPallas:
    """JAX/Pallas re-implementation of promcse PrefixEncoder."""

    def __init__(self, *, pre_seq_len, hidden_size, prefix_hidden_size,
                 num_hidden_layers, prefix_projection=True, key=None):
        self.prefix_projection = prefix_projection
        self.pre_seq_len = pre_seq_len
        self.hidden_size = hidden_size
        self.prefix_hidden_size = prefix_hidden_size
        self.num_hidden_layers = num_hidden_layers
        self.out_dim = num_hidden_layers * 2 * hidden_size

        if key is None:
            key = jax.random.PRNGKey(0)
        k_emb, k_w1, k_b1, k_w2, k_b2 = jax.random.split(key, 5)

        if prefix_projection:
            # Embedding(pre_seq_len, hidden_size) — gather stays f32.
            self.embedding = jax.random.normal(
                k_emb, (pre_seq_len, hidden_size), jnp.float32) * 0.02
            # Linear(hidden_size, prefix_hidden_size): stored (in, out), bf16 stream.
            # NOTE: bf16 weights / activations with f32 MXU accumulation is a
            # deliberate precision trade vs the f32 PyTorch module.
            self.w1 = (jax.random.normal(
                k_w1, (hidden_size, prefix_hidden_size), jnp.float32)
                * 0.02).astype(jnp.bfloat16)
            self.b1 = (jax.random.normal(
                k_b1, (1, prefix_hidden_size), jnp.float32) * 0.02)
            # Linear(prefix_hidden_size, 2*layers*hidden): stored (in, out), bf16.
            self.w2 = (jax.random.normal(
                k_w2, (prefix_hidden_size, self.out_dim), jnp.float32)
                * 0.02).astype(jnp.bfloat16)
            self.b2 = (jax.random.normal(
                k_b2, (1, self.out_dim), jnp.float32) * 0.02)
        else:
            # Embedding(pre_seq_len, 2*layers*hidden)
            self.embedding = jax.random.normal(
                k_emb, (pre_seq_len, self.out_dim), jnp.float32) * 0.02

    def __call__(self, prefix):
        """prefix: int32 (batch, prefix_len) -> (batch, prefix_len, 2*L*H)."""
        B, P = prefix.shape
        if self.prefix_projection:
            # TODO(synk): the embedding gather has no matmul hot path; kept in JAX.
            prefix_tokens = jnp.take(self.embedding, prefix, axis=0)  # (B,P,H)
            x = prefix_tokens.reshape(B * P, self.hidden_size).astype(jnp.bfloat16)
            out = prefix_mlp(x, self.w1, self.b1, self.w2, self.b2)
            return out.reshape(B, P, self.out_dim)
        else:
            # TODO(synk): pure embedding lookup branch — plain-JAX gather.
            return jnp.take(self.embedding, prefix, axis=0)


def _reference(enc, prefix):
    """Pure-JAX reference mirroring the PyTorch forward (same bf16 weights)."""
    tok = jnp.take(enc.embedding, prefix, axis=0)
    if not enc.prefix_projection:
        return tok
    xb = tok.astype(jnp.bfloat16)
    h = jnp.tanh(jnp.dot(xb, enc.w1, preferred_element_type=jnp.float32)
                 + enc.b1[0])
    hb = h.astype(jnp.bfloat16)
    return jnp.dot(hb, enc.w2, preferred_element_type=jnp.float32) + enc.b2[0]


if __name__ == "__main__":
    # Small shapes consistent with the module.
    batch = 2
    pre_seq_len = 8          # prefix length
    hidden_size = 32
    prefix_hidden_size = 64
    num_hidden_layers = 2    # -> output dim = 2*2*32 = 128

    enc = PrefixEncoderPallas(
        pre_seq_len=pre_seq_len,
        hidden_size=hidden_size,
        prefix_hidden_size=prefix_hidden_size,
        num_hidden_layers=num_hidden_layers,
        prefix_projection=True,
        key=jax.random.PRNGKey(0),
    )

    # prefix token ids: (batch, prefix_len), each row = arange(pre_seq_len)
    prefix = jnp.tile(jnp.arange(pre_seq_len, dtype=jnp.int32)[None, :],
                      (batch, 1))

    out = enc(prefix)
    out = jax.block_until_ready(out)

    ref = _reference(enc, prefix)
    assert out.shape == (batch, pre_seq_len,
                         num_hidden_layers * 2 * hidden_size)
    assert out.dtype == jnp.float32
    assert jnp.allclose(out, ref, atol=1e-3, rtol=1e-2), (
        float(jnp.max(jnp.abs(out - ref))))

    print("KERNEL_OK")
</pallas_src>

<mosaic_0001>
module attributes {stable_mosaic.version = 11 : i64} {
  func.func @_prefix_mlp_kernel(%arg0: i32, %arg1: i32, %arg2: memref<16x32xbf16, #tpu.memory_space<vmem>>, %arg3: memref<32x64xbf16, #tpu.memory_space<vmem>>, %arg4: memref<1x64xf32, #tpu.memory_space<vmem>>, %arg5: memref<64x128xbf16, #tpu.memory_space<vmem>>, %arg6: memref<1x128xf32, #tpu.memory_space<vmem>>, %arg7: memref<16x128xf32, #tpu.memory_space<vmem>>, %arg8: memref<16x64xbf16, #tpu.memory_space<vmem>>) attributes {dimension_semantics = [#tpu.dimension_semantics<parallel>, #tpu.dimension_semantics<arbitrary>], iteration_bounds = array<i64: 1, 1>, scalar_prefetch = 0 : i64, scratch_operands = 1 : i64, tpu.core_type = #tpu.core_type<tc>, window_params = [{transform_indices = @transform_0, window_bounds = array<i64: 16, 32>}, {pipeline_mode = #tpu.pipeline_mode<synchronous>, transform_indices = @transform_1, window_bounds = array<i64: 32, 64>}, {pipeline_mode = #tpu.pipeline_mode<synchronous>, transform_indices = @transform_2, window_bounds = array<i64: 1, 64>}, {transform_indices = @transform_3, window_bounds = array<i64: 64, 128>}, {transform_indices = @transform_4, window_bounds = array<i64: 1, 128>}, {transform_indices = @transform_5, window_bounds = array<i64: 16, 128>}]} {
    %c0_i32 = arith.constant 0 : i32
    %0 = arith.cmpi eq, %arg1, %c0_i32 : i32
    %1 = arith.extui %0 : i1 to i32
    %c0_i32_0 = arith.constant 0 : i32
    %2 = arith.cmpi ne, %1, %c0_i32_0 : i32
    scf.if %2 {
      %c0_8 = arith.constant 0 : index
      %c0_9 = arith.constant 0 : index
      %10 = vector.load %arg2[%c0_8, %c0_9] : memref<16x32xbf16, #tpu.memory_space<vmem>>, vector<16x32xbf16>
      %c0_10 = arith.constant 0 : index
      %c0_11 = arith.constant 0 : index
      %11 = vector.load %arg3[%c0_10, %c0_11] : memref<32x64xbf16, #tpu.memory_space<vmem>>, vector<32x64xbf16>
      %cst_12 = arith.constant dense<0.000000e+00> : vector<16x64xf32>
      %12 = tpu.matmul %10, %11, %cst_12 {dimension_numbers = #tpu.dot_dimension_numbers<[1], [0], [0], [1], [0, 0, 1, 1], [], []>} : vector<16x32xbf16>, vector<32x64xbf16>, vector<16x64xf32> -> vector<16x64xf32>
      %c0_13 = arith.constant 0 : index
      %c0_14 = arith.constant 0 : index
      %13 = vector.load %arg4[%c0_13, %c0_14] : memref<1x64xf32, #tpu.memory_space<vmem>>, vector<1x64xf32>
      %14 = vector.broadcast %13 : vector<1x64xf32> to vector<16x64xf32>
      %15 = arith.addf %12, %14 : vector<16x64xf32>
      %16 = math.tanh %15 : vector<16x64xf32>
      %17 = arith.truncf %16 : vector<16x64xf32> to vector<16x64xbf16>
      %c0_15 = arith.constant 0 : index
      %c0_16 = arith.constant 0 : index
      %18 = vector.load %arg8[%c0_15, %c0_16] : memref<16x64xbf16, #tpu.memory_space<vmem>>, vector<16x64xbf16>
      tpu.vector_store %arg8[%c0_15, %c0_16], %17 {strides = array<i32>} : memref<16x64xbf16, #tpu.memory_space<vmem>>, vector<16x64xbf16>,
    } else {
    }
    %c0 = arith.constant 0 : index
    %c0_1 = arith.constant 0 : index
    %3 = vector.load %arg8[%c0, %c0_1] : memref<16x64xbf16, #tpu.memory_space<vmem>>, vector<16x64xbf16>
    %c0_2 = arith.constant 0 : index
    %c0_3 = arith.constant 0 : index
    %4 = vector.load %arg5[%c0_2, %c0_3] : memref<64x128xbf16, #tpu.memory_space<vmem>>, vector<64x128xbf16>
    %cst = arith.constant dense<0.000000e+00> : vector<16x128xf32>
    %5 = tpu.matmul %3, %4, %cst {dimension_numbers = #tpu.dot_dimension_numbers<[1], [0], [0], [1], [0, 0, 1, 1], [], []>} : vector<16x64xbf16>, vector<64x128xbf16>, vector<16x128xf32> -> vector<16x128xf32>
    %c0_4 = arith.constant 0 : index
    %c0_5 = arith.constant 0 : index
    %6 = vector.load %arg6[%c0_4, %c0_5] : memref<1x128xf32, #tpu.memory_space<vmem>>, vector<1x128xf32>
    %7 = vector.broadcast %6 : vector<1x128xf32> to vector<16x128xf32>
    %8 = arith.addf %5, %7 : vector<16x128xf32>
    %c0_6 = arith.constant 0 : index
    %c0_7 = arith.constant 0 : index
    %9 = vector.load %arg7[%c0_6, %c0_7] : memref<16x128xf32, #tpu.memory_space<vmem>>, vector<16x128xf32>
    tpu.vector_store %arg7[%c0_6, %c0_7], %8 {strides = array<i32>} : memref<16x128xf32, #tpu.memory_space<vmem>>, vector<16x128xf32>,
    return
  }
  func.func @transform_0(%arg0: i32, %arg1: i32) -> (i32, i32) {
    %c0_i32 = arith.constant 0 : i32
    %c0_i32_0 = arith.constant 0 : i32
    return %arg0, %c0_i32 : i32, i32
  }
  func.func @transform_1(%arg0: i32, %arg1: i32) -> (i32, i32) {
    %c0_i32 = arith.constant 0 : i32
    %c0_i32_0 = arith.constant 0 : i32
    %c0_i32_1 = arith.constant 0 : i32
    return %c0_i32, %c0_i32_0 : i32, i32
  }
  func.func @transform_2(%arg0: i32, %arg1: i32) -> (i32, i32) {
    %c0_i32 = arith.constant 0 : i32
    %c0_i32_0 = arith.constant 0 : i32
    %c0_i32_1 = arith.constant 0 : i32
    return %c0_i32, %c0_i32_0 : i32, i32
  }
  func.func @transform_3(%arg0: i32, %arg1: i32) -> (i32, i32) {
    %c0_i32 = arith.constant 0 : i32
    %c0_i32_0 = arith.constant 0 : i32
    return %c0_i32, %arg1 : i32, i32
  }
  func.func @transform_4(%arg0: i32, %arg1: i32) -> (i32, i32) {
    %c0_i32 = arith.constant 0 : i32
    %c0_i32_0 = arith.constant 0 : i32
    return %c0_i32, %arg1 : i32, i32
  }
  func.func @transform_5(%arg0: i32, %arg1: i32) -> (i32, i32) {
    %c0_i32 = arith.constant 0 : i32
    return %arg0, %arg1 : i32, i32
  }
}

</mosaic_0001>

<bundles_post_ra>
// kernel: prefix_mlp.1
= control target key start
LH: loop header
LB: loop body
LE: loop exit
PB: predicated region body
PF: predicated region fallthrough
CT: control target
= control target key end

     0   :  { %10 = vsyncpa [#allocation4], 0  ;;  %s422_s0 = inlined_call_operand.hbm [shape: bf16[16,32], index: 0, kind: input, shape index: {}]   ;;  %s423_s1 = inlined_call_operand.hbm [shape: bf16[32,64], index: 1, kind: input, shape index: {}]   ;;  %s424_s2 = inlined_call_operand.vmem [shape: f32[1,64], index: 2, kind: input, shape index: {}]   ;;  %s425_s3 = inlined_call_operand.hbm [shape: bf16[64,128], index: 3, kind: input, shape index: {}]   ;;  %s426_s4 = inlined_call_operand.vmem [shape: f32[1,128], index: 4, kind: input, shape index: {}]   ;;  %s427_s5 = inlined_call_operand.hbm [shape: f32[16,128], index: 5, kind: output, shape index: {}]  }
   0x1   :  { %11 = vsyncpa [#allocation7], 0 }
   0x2   :  { %12 = vsyncpa [#allocation5], 0  ;;  %s30_s20 = sshll.u32 %s423_s1, 4  ;;  %s366_s21 = smov [#allocation6]   ;;  %s31_s20 = int_to_ptr.hbm [resolvable:$true] %s30_s20 }
   0x3   :  { %s32_s22 = sshll.u32 %s366_s21, 4  ;;  %s17_s25 = sshll.u32 %s422_s0, 4  ;;  %s33_s22 = int_to_ptr.vmem [resolvable:$true] %s32_s22  ;;  %s18_s25 = int_to_ptr.hbm [resolvable:$true] %s17_s25 }
   0x4   :  { %s367_s26 = smov 64   ;;  %s368_s27 = smov 4  }
   0x5   :  { %38 = dma.hbm_to_vmem [thread:$0]  %s31_s20, 256, %s33_s22, [#allocation7], %s367_s26, %s367_s26, %s368_s27  }
   0x6   :  { %s369_s28 = smov [#allocation3]   ;;  %s45_s7 = sshll.u32 %s425_s3, 4  ;;  %s46_s7 = int_to_ptr.hbm [resolvable:$true] %s45_s7 }
   0x7   :  { %s19_s29 = sshll.u32 %s369_s28, 4  ;;  %s370_s1 = smov [#allocation8]   ;;  %s20_s29 = int_to_ptr.vmem [resolvable:$true] %s19_s29 }
   0x8   :  { %25 = dma.hbm_to_vmem [thread:$0]  %s18_s25, 128, %s20_s29, [#allocation4], %s367_s26, %s367_s26, %s368_s27  }
   0x9   :  { %s47_s8 = sshll.u32 %s370_s1, 4  ;;  %s48_s8 = int_to_ptr.vmem [resolvable:$true] %s47_s8 }
   0xa   :  { %53 = dma.hbm_to_vmem [thread:$0]  %s46_s7, 512, %s48_s8, [#allocation7], %s367_s26, %s367_s26, %s368_s27  }
   0xb   :  { %360 = dma.done.wait [#allocation4], 128  }
   0xc   :  { %361 = vsyncadd [#allocation4], 4294967168 }
   0xd   :  { %362 = dma.done.wait [#allocation7], 768  }
   0xe   :  { %363 = vsyncadd [#allocation7], 4294966528  ;;  %v244_v0 = vld [vmem:[#allocation6 + $0x8] sm:$0xff]  ;;  %v243_v1 = vld [vmem:[#allocation6] sm:$0xff]  ;;  %vm100_vm0 = vcmask 261120   ;;  %vm122_vm1 = vcmask 519168  }
   0xf   :  { %110 = vmatpush.bf16.msra.mxu0 %v244_v0  ;;  %v242_v2 = vld [vmem:[#allocation3] sm:$0xff]  ;;  %v249_v3 = vld [vmem:[#allocation8 + $0x18] sm:$0xff]  ;;  %v248_v4 = vld [vmem:[#allocation8 + $0x10] sm:$0xff]  ;;  %vm168_vm2 = vcmask 523264   ;;  %s194_s14 = sshll.u32 %s427_s5, 4  ;;  %s372_s15 = smov 128   ;;  %s195_s14 = int_to_ptr.hbm [resolvable:$true] %s194_s14 }
  0x10   :  { %176 = vmatpush.bf16.msra.mxu1 %v249_v3  ;;  %v247_v5 = vld [vmem:[#allocation8 + $0x8] sm:$0xff]  ;;  %v246_v6 = vld [vmem:[#allocation8] sm:$0xff]  ;;  %s373_s16 = smov 8  }
  0x11   :  { %v258_v7 = vld [vmem:[%s424_s2] ss:$0 sm:$0xff]  ;;  %s371_s2 = smov [#allocation9]  }
  0x12   :  { %v259_v17 = vld [vmem:[%s426_s4] ss:$0 sm:$0xff]  ;;  %s192_s11 = sshll.u32 %s371_s2, 4  ;;  %s193_s11 = int_to_ptr.vmem [resolvable:$true] %s192_s11 }
  0x13   :  { %111 = vmatpush.bf16.msra.mxu0 %v243_v1 }
  0x14   :  { %177 = vmatpush.bf16.msra.mxu1 %v248_v4 }
  0x16   :  { %220 = vmatmul.msk.bf16.vlgmr.msra.gmra.mxu0 %vm100_vm0, %v242_v2 }
  0x18   :  { %178 = vmatpush.bf16.msra.mxu1 %v247_v5 }
  0x1c   :  { %179 = vmatpush.bf16.msra.mxu1 %v246_v6 }
  0x93   :  { %v113_v8 = vpop.f32.mrf.mxu0 }
  0x94   :  { %v114_v9 = vadd.f32 %v258_v7, %v113_v8 }
  0x96   :  { %260 = vtanh.f32 %v114_v9 }
  0x9b   :  { %v115_v10 = vpop.f32.mrf.mxu0 }
  0x9c   :  { %v261_v11 = vpop.eup %260  ;;  %v116_v12 = vadd.f32 %v258_v7, %v115_v10 }
  0x9d   :  { %v120_v13 = vpack.c.bf16 %v261_v11, %v261_v11 }
  0x9e   :  { %262 = vtanh.f32 %v116_v12 }
  0x9f   :  { %123 = vst.msk [vmem:[#allocation2] sm:$0xf] %vm122_vm1, %v120_v13 }
  0xa4   :  { %v263_v14 = vpop.eup %262 }
  0xa5   :  { %v121_v15 = vpack.c.bf16 %v263_v14, %v263_v14 }
  0xa7   :  { %124 = vst.msk [vmem:[#allocation2 + $0x4] sm:$0xf] %vm122_vm1, %v121_v15 }
  0xae   :  { %v245_v16 = vld [vmem:[#allocation2] sm:$0xff] }
  0xaf   :  { %241 = vmatmul.msk.bf16.vlgmr.msra.gmra.mxu1 %vm168_vm2, %v245_v16 }
 0x12c   :  { %v181_v18 = vpop.f32.mrf.mxu1 }
 0x12d   :  { %v182_v19 = vadd.f32 %v259_v17, %v181_v18 }
 0x12f   :  { %186 = vst [vmem:[#allocation9] sm:$0xff] %v182_v19 }
 0x134   :  { %v183_v20 = vpop.f32.mrf.mxu1 }
 0x135   :  { %v184_v21 = vadd.f32 %v259_v17, %v183_v20 }
 0x137   :  { %187 = vst [vmem:[#allocation9 + $0x8] sm:$0xff] %v184_v21 }
 0x138   :  { %200 = dma.vmem_to_hbm [thread:$0]  %s193_s11, 256, %s195_s14, [#allocation5], %s372_s15, %s372_s15, %s373_s16  }
 0x139   :  { %364 = dma.done.wait [#allocation5], 256  }
 0x13a   :  { %365 = vsyncadd [#allocation5], 4294967040 }
 0x13b   :  { %205 = vsyncpa [#allocation4], 1 }
 0x13c   :  { %206 = vsyncpa [#allocation7], 1 }
 0x13d   :  { %207 = vsyncpa [#allocation5], 1 }

</bundles_post_ra>
